<compile_context>
chip_gen: v7x
topology: tpu7x:2x2x1
jax: 0.10.0
libtpu: 0.0.40
codegen_flags: <defaults>
</compile_context>

<pallas_src>
import functools

import jax
import jax.numpy as jnp
from jax import lax
from jax.experimental import pallas as pl
from jax.experimental.pallas import tpu as pltpu


def _residual_kernel(x_ref, w1_ref, b1_ref, w2_ref, b2_ref, mask_ref, o_ref, *, W):
    # x_ref   : (C, L)       f32   L = images_per_block * H*W, lane-dense
    # w1_ref  : (C2, C)      bf16  1x1 conv weight (BN1 scale folded in)
    # b1_ref  : (C2, 1)      f32   BN1 bias
    # w2_ref  : (C, 9*C2)    bf16  3x3 conv weight (BN2 scale folded in)
    # b2_ref  : (C, 1)       f32   BN2 bias
    # mask_ref: (9*C2, L)    bf16  zero-padding validity mask, tap-major rows
    # o_ref   : (C, L)       f32
    x = x_ref[...]                                            # (C, L) f32
    L = x.shape[1]

    # ---- conv1x1 + BN1 bias + LeakyReLU(0.1) ----
    h = jnp.dot(w1_ref[...], x.astype(jnp.bfloat16),
                preferred_element_type=jnp.float32)           # (C2, L) f32
    h = h + b1_ref[...]
    h = jnp.where(h > 0, h, 0.1 * h)

    # ---- im2col: 9 lane-rolled taps, register/temp resident (no scratch) ----
    taps = []
    for dy in (-1, 0, 1):
        for dx in (-1, 0, 1):
            off = dy * W + dx                                 # static shift
            taps.append(h if off == 0 else pltpu.roll(h, (-off) % L, 1))
    # Single f32 concat (8-row aligned chunks), one cast, one bf16 mask mul.
    p = jnp.concatenate(taps, axis=0).astype(jnp.bfloat16) * mask_ref[...]

    # ---- conv3x3 as one big-contraction matmul + BN2 bias + LeakyReLU ----
    acc = jnp.dot(w2_ref[...], p, preferred_element_type=jnp.float32)  # (C, L)
    acc = acc + b2_ref[...]
    acc = jnp.where(acc > 0, acc, 0.1 * acc)

    # ---- residual add ----
    o_ref[...] = (acc + x).astype(o_ref.dtype)


def _choose_images_per_block(N, HW, target_lanes=1024):
    """Largest divisor of N with block <= target_lanes lanes, keeping >=2 grid
    blocks when N >= 2 (v7x has 2 TensorCores; don't collapse to one step)."""
    best = 1
    for ipb in range(1, N + 1):
        if N % ipb:
            continue
        if ipb * HW > target_lanes:
            break
        if N >= 2 and N // ipb < 2:
            break
        best = ipb
    return best


def _vmem_limit_bytes(C, C2, L):
    """VMEM budget derived from actual block sizes (not a blanket 48 MiB)."""
    f32, bf16 = 4, 2
    est = 0
    est += 2 * (C * L * f32) * 2                 # x + out blocks, double-buffered
    est += 2 * (C2 * C + C * 9 * C2) * bf16      # w1 + w2
    est += 2 * (C2 + C) * f32                    # biases
    est += 2 * (9 * C2 * L) * bf16               # resident mask block
    est += C2 * L * (f32 + bf16)                 # h (f32) + bf16 copy
    est += 9 * C2 * L * (f32 + bf16)             # rolled taps + bf16 im2col
    est += C * L * f32                           # f32 accumulator
    return int(min(max(2 * est, 8 * 1024 * 1024), 32 * 1024 * 1024))


def _fold_bn(gamma, beta, mean, var, eps=1e-5):
    scale = gamma / jnp.sqrt(var + eps)
    bias = beta - mean * scale
    return scale, bias


def residual_layer(x_nchw, w1_oihw, w2_oihw, s1, b1, s2, b2):
    """ResidualLayer forward.  x: (N,C,H,W) f32; conv weights in PyTorch OIHW."""
    N, C, H, W = x_nchw.shape
    assert C % 2 == 0
    C2 = C // 2
    HW = H * W

    ipb = _choose_images_per_block(N, HW)        # whole images per lane block
    assert N % ipb == 0
    L = ipb * HW
    n_blocks = N // ipb

    # Fold the (inference) BN scale into the conv weights; bf16 MXU operands.
    w1_eff = w1_oihw[:, :, 0, 0] * s1[:, None]                        # (C2, C)
    w2_eff = (jnp.transpose(w2_oihw, (0, 2, 3, 1))                    # (C,3,3,C2)
              * s2[:, None, None, None]).reshape(C, 9 * C2)           # (C, 9*C2)
    w1_k = w1_eff.astype(jnp.bfloat16)
    w2_k = w2_eff.astype(jnp.bfloat16)
    b1_k = b1.astype(jnp.float32).reshape(C2, 1)
    b2_k = b2.astype(jnp.float32).reshape(C, 1)

    # Zero-padding validity masks for the 9 taps, tiled across the ipb images
    # of one lane block and repeated over the C2 tap channels (tap-major rows,
    # matching the in-kernel concat).  Values are exactly 0/1 -> bf16 is exact.
    yy, xx = jnp.meshgrid(jnp.arange(H), jnp.arange(W), indexing="ij")
    rows = []
    for dy in (-1, 0, 1):
        for dx in (-1, 0, 1):
            ok = ((yy + dy >= 0) & (yy + dy < H) &
                  (xx + dx >= 0) & (xx + dx < W))
            rows.append(ok.reshape(HW))
    mask9 = jnp.stack(rows)                                           # (9, HW)
    mask = jnp.repeat(jnp.tile(mask9, (1, ipb)), C2, axis=0)          # (9*C2, L)
    mask = mask.astype(jnp.bfloat16)

    # Fold batch into the lane axis: (C, N*HW), image n at lanes [n*HW,(n+1)*HW).
    xf = jnp.transpose(x_nchw, (1, 0, 2, 3)).reshape(C, N * HW)

    out_flat = pl.pallas_call(
        functools.partial(_residual_kernel, W=W),
        out_shape=jax.ShapeDtypeStruct((C, N * HW), jnp.float32),
        grid_spec=pltpu.PrefetchScalarGridSpec(
            num_scalar_prefetch=0,
            grid=(n_blocks,),
            in_specs=[
                pl.BlockSpec((C, L), lambda b: (0, b)),           # x
                pl.BlockSpec((C2, C), lambda b: (0, 0)),          # w1 (bf16)
                pl.BlockSpec((C2, 1), lambda b: (0, 0)),          # b1
                pl.BlockSpec((C, 9 * C2), lambda b: (0, 0)),      # w2 (bf16)
                pl.BlockSpec((C, 1), lambda b: (0, 0)),           # b2
                pl.BlockSpec((9 * C2, L), lambda b: (0, 0)),      # tap masks (bf16)
            ],
            out_specs=pl.BlockSpec((C, L), lambda b: (0, b)),
        ),
        compiler_params=pltpu.CompilerParams(
            dimension_semantics=("parallel",),
            vmem_limit_bytes=_vmem_limit_bytes(C, C2, L),
        ),
    )(xf, w1_k, b1_k, w2_k, b2_k, mask)

    return jnp.transpose(out_flat.reshape(C, N, H, W), (1, 0, 2, 3))


def _reference(x_nchw, w1_oihw, w2_oihw, s1, b1, s2, b2):
    # Pure-JAX reference (lax conv) with the same bf16-operand / f32-accum recipe.
    dn = ("NCHW", "OIHW", "NCHW")
    w1b = (w1_oihw * s1[:, None, None, None]).astype(jnp.bfloat16)
    w2b = (w2_oihw * s2[:, None, None, None]).astype(jnp.bfloat16)
    h = lax.conv_general_dilated(x_nchw.astype(jnp.bfloat16), w1b, (1, 1),
                                 "VALID", dimension_numbers=dn,
                                 preferred_element_type=jnp.float32)
    h = h + b1.reshape(1, -1, 1, 1)
    h = jnp.where(h > 0, h, 0.1 * h)
    y = lax.conv_general_dilated(h.astype(jnp.bfloat16), w2b, (1, 1),
                                 ((1, 1), (1, 1)), dimension_numbers=dn,
                                 preferred_element_type=jnp.float32)
    y = y + b2.reshape(1, -1, 1, 1)
    y = jnp.where(y > 0, y, 0.1 * y)
    return y + x_nchw


if __name__ == "__main__":
    N, C, H, W = 2, 16, 16, 16
    C2 = C // 2

    key = jax.random.PRNGKey(0)
    ks = jax.random.split(key, 11)

    # PyTorch Conv2d weights: (out, in, kh, kw), bias=False.
    w1_t = jax.random.normal(ks[0], (C2, C, 1, 1), jnp.float32) * 0.2
    w2_t = jax.random.normal(ks[1], (C, C2, 3, 3), jnp.float32) * 0.2

    # BatchNorm affine params + running stats (inference mode).
    g1 = 1.0 + 0.1 * jax.random.normal(ks[2], (C2,), jnp.float32)
    be1 = 0.1 * jax.random.normal(ks[3], (C2,), jnp.float32)
    m1 = 0.1 * jax.random.normal(ks[4], (C2,), jnp.float32)
    v1 = 1.0 + 0.1 * jax.random.uniform(ks[5], (C2,), jnp.float32)
    g2 = 1.0 + 0.1 * jax.random.normal(ks[6], (C,), jnp.float32)
    be2 = 0.1 * jax.random.normal(ks[7], (C,), jnp.float32)
    m2 = 0.1 * jax.random.normal(ks[8], (C,), jnp.float32)
    v2 = 1.0 + 0.1 * jax.random.uniform(ks[9], (C,), jnp.float32)

    s1, b1 = _fold_bn(g1, be1, m1, v1)
    s2, b2 = _fold_bn(g2, be2, m2, v2)

    x = jax.random.normal(ks[10], (N, C, H, W), jnp.float32)

    out = residual_layer(x, w1_t, w2_t, s1, b1, s2, b2)
    out = jax.block_until_ready(out)

    ref = _reference(x, w1_t, w2_t, s1, b1, s2, b2)
    assert out.shape == (N, C, H, W)
    max_err = float(jnp.max(jnp.abs(out - ref)))
    assert jnp.allclose(out, ref, atol=2e-3, rtol=2e-3), max_err

    print("KERNEL_OK")
</pallas_src>

<mosaic_0001>
module attributes {stable_mosaic.version = 11 : i64} {
  func.func @_residual_kernel(%arg0: i32, %arg1: memref<16x256xf32, #tpu.memory_space<vmem>>, %arg2: memref<8x16xbf16, #tpu.memory_space<vmem>>, %arg3: memref<8x1xf32, #tpu.memory_space<vmem>>, %arg4: memref<16x72xbf16, #tpu.memory_space<vmem>>, %arg5: memref<16x1xf32, #tpu.memory_space<vmem>>, %arg6: memref<72x256xbf16, #tpu.memory_space<vmem>>, %arg7: memref<16x256xf32, #tpu.memory_space<vmem>>) attributes {dimension_semantics = [#tpu.dimension_semantics<parallel>], iteration_bounds = array<i64: 2>, scalar_prefetch = 0 : i64, scratch_operands = 0 : i64, tpu.core_type = #tpu.core_type<tc>, window_params = [{transform_indices = @transform_0, window_bounds = array<i64: 16, 256>}, {pipeline_mode = #tpu.pipeline_mode<synchronous>, transform_indices = @transform_1, window_bounds = array<i64: 8, 16>}, {pipeline_mode = #tpu.pipeline_mode<synchronous>, transform_indices = @transform_2, window_bounds = array<i64: 8, 1>}, {pipeline_mode = #tpu.pipeline_mode<synchronous>, transform_indices = @transform_3, window_bounds = array<i64: 16, 72>}, {pipeline_mode = #tpu.pipeline_mode<synchronous>, transform_indices = @transform_4, window_bounds = array<i64: 16, 1>}, {pipeline_mode = #tpu.pipeline_mode<synchronous>, transform_indices = @transform_5, window_bounds = array<i64: 72, 256>}, {transform_indices = @transform_6, window_bounds = array<i64: 16, 256>}]} {
    %c0 = arith.constant 0 : index
    %c0_0 = arith.constant 0 : index
    %0 = vector.load %arg1[%c0, %c0_0] : memref<16x256xf32, #tpu.memory_space<vmem>>, vector<16x256xf32>
    %c0_1 = arith.constant 0 : index
    %c0_2 = arith.constant 0 : index
    %1 = vector.load %arg2[%c0_1, %c0_2] : memref<8x16xbf16, #tpu.memory_space<vmem>>, vector<8x16xbf16>
    %2 = arith.truncf %0 : vector<16x256xf32> to vector<16x256xbf16>
    %cst = arith.constant dense<0.000000e+00> : vector<8x256xf32>
    %3 = tpu.matmul %1, %2, %cst {dimension_numbers = #tpu.dot_dimension_numbers<[1], [0], [0], [1], [0, 0, 1, 1], [], []>} : vector<8x16xbf16>, vector<16x256xbf16>, vector<8x256xf32> -> vector<8x256xf32>
    %c0_3 = arith.constant 0 : index
    %c0_4 = arith.constant 0 : index
    %4 = vector.load %arg3[%c0_3, %c0_4] : memref<8x1xf32, #tpu.memory_space<vmem>>, vector<8x1xf32>
    %5 = vector.broadcast %4 : vector<8x1xf32> to vector<8x256xf32>
    %6 = arith.addf %3, %5 : vector<8x256xf32>
    %cst_5 = arith.constant 0.000000e+00 : f32
    %7 = vector.broadcast %cst_5 : f32 to vector<8x256xf32>
    %8 = arith.cmpf ogt, %6, %7 : vector<8x256xf32>
    %cst_6 = arith.constant 1.000000e-01 : f32
    %9 = vector.broadcast %cst_6 : f32 to vector<8x256xf32>
    %10 = arith.mulf %9, %6 : vector<8x256xf32>
    %11 = arith.select %8, %6, %10 : vector<8x256xi1>, vector<8x256xf32>
    %c17_i32 = arith.constant 17 : i32
    %12 = tpu.dynamic_rotate %11 by %c17_i32 dim 1 : vector<8x256xf32>, i32 -> vector<8x256xf32>
    %c16_i32 = arith.constant 16 : i32
    %13 = tpu.dynamic_rotate %11 by %c16_i32 dim 1 : vector<8x256xf32>, i32 -> vector<8x256xf32>
    %c15_i32 = arith.constant 15 : i32
    %14 = tpu.dynamic_rotate %11 by %c15_i32 dim 1 : vector<8x256xf32>, i32 -> vector<8x256xf32>
    %c1_i32 = arith.constant 1 : i32
    %15 = tpu.dynamic_rotate %11 by %c1_i32 dim 1 : vector<8x256xf32>, i32 -> vector<8x256xf32>
    %c255_i32 = arith.constant 255 : i32
    %16 = tpu.dynamic_rotate %11 by %c255_i32 dim 1 : vector<8x256xf32>, i32 -> vector<8x256xf32>
    %c241_i32 = arith.constant 241 : i32
    %17 = tpu.dynamic_rotate %11 by %c241_i32 dim 1 : vector<8x256xf32>, i32 -> vector<8x256xf32>
    %c240_i32 = arith.constant 240 : i32
    %18 = tpu.dynamic_rotate %11 by %c240_i32 dim 1 : vector<8x256xf32>, i32 -> vector<8x256xf32>
    %c239_i32 = arith.constant 239 : i32
    %19 = tpu.dynamic_rotate %11 by %c239_i32 dim 1 : vector<8x256xf32>, i32 -> vector<8x256xf32>
    %20 = tpu.concatenate %12, %13, %14, %15, %11, %16, %17, %18, %19 in 0 : vector<8x256xf32>, vector<8x256xf32>, vector<8x256xf32>, vector<8x256xf32>, vector<8x256xf32>, vector<8x256xf32>, vector<8x256xf32>, vector<8x256xf32>, vector<8x256xf32> -> vector<72x256xf32>
    %21 = arith.truncf %20 : vector<72x256xf32> to vector<72x256xbf16>
    %c0_7 = arith.constant 0 : index
    %c0_8 = arith.constant 0 : index
    %22 = vector.load %arg6[%c0_7, %c0_8] : memref<72x256xbf16, #tpu.memory_space<vmem>>, vector<72x256xbf16>
    %23 = arith.mulf %21, %22 : vector<72x256xbf16>
    %c0_9 = arith.constant 0 : index
    %c0_10 = arith.constant 0 : index
    %24 = vector.load %arg4[%c0_9, %c0_10] : memref<16x72xbf16, #tpu.memory_space<vmem>>, vector<16x72xbf16>
    %cst_11 = arith.constant dense<0.000000e+00> : vector<16x256xf32>
    %25 = tpu.matmul %24, %23, %cst_11 {dimension_numbers = #tpu.dot_dimension_numbers<[1], [0], [0], [1], [0, 0, 1, 1], [], []>} : vector<16x72xbf16>, vector<72x256xbf16>, vector<16x256xf32> -> vector<16x256xf32>
    %c0_12 = arith.constant 0 : index
    %c0_13 = arith.constant 0 : index
    %26 = vector.load %arg5[%c0_12, %c0_13] : memref<16x1xf32, #tpu.memory_space<vmem>>, vector<16x1xf32>
    %27 = vector.broadcast %26 : vector<16x1xf32> to vector<16x256xf32>
    %28 = arith.addf %25, %27 : vector<16x256xf32>
    %cst_14 = arith.constant 0.000000e+00 : f32
    %29 = vector.broadcast %cst_14 : f32 to vector<16x256xf32>
    %30 = arith.cmpf ogt, %28, %29 : vector<16x256xf32>
    %cst_15 = arith.constant 1.000000e-01 : f32
    %31 = vector.broadcast %cst_15 : f32 to vector<16x256xf32>
    %32 = arith.mulf %31, %28 : vector<16x256xf32>
    %33 = arith.select %30, %28, %32 : vector<16x256xi1>, vector<16x256xf32>
    %34 = arith.addf %33, %0 : vector<16x256xf32>
    %c0_16 = arith.constant 0 : index
    %c0_17 = arith.constant 0 : index
    %35 = vector.load %arg7[%c0_16, %c0_17] : memref<16x256xf32, #tpu.memory_space<vmem>>, vector<16x256xf32>
    tpu.vector_store %arg7[%c0_16, %c0_17], %34 {strides = array<i32>} : memref<16x256xf32, #tpu.memory_space<vmem>>, vector<16x256xf32>,
    return
  }
  func.func @transform_0(%arg0: i32) -> (i32, i32) {
    %c0_i32 = arith.constant 0 : i32
    %c0_i32_0 = arith.constant 0 : i32
    return %c0_i32, %arg0 : i32, i32
  }
  func.func @transform_1(%arg0: i32) -> (i32, i32) {
    %c0_i32 = arith.constant 0 : i32
    %c0_i32_0 = arith.constant 0 : i32
    %c0_i32_1 = arith.constant 0 : i32
    return %c0_i32, %c0_i32_0 : i32, i32
  }
  func.func @transform_2(%arg0: i32) -> (i32, i32) {
    %c0_i32 = arith.constant 0 : i32
    %c0_i32_0 = arith.constant 0 : i32
    %c0_i32_1 = arith.constant 0 : i32
    return %c0_i32, %c0_i32_0 : i32, i32
  }
  func.func @transform_3(%arg0: i32) -> (i32, i32) {
    %c0_i32 = arith.constant 0 : i32
    %c0_i32_0 = arith.constant 0 : i32
    %c0_i32_1 = arith.constant 0 : i32
    return %c0_i32, %c0_i32_0 : i32, i32
  }
  func.func @transform_4(%arg0: i32) -> (i32, i32) {
    %c0_i32 = arith.constant 0 : i32
    %c0_i32_0 = arith.constant 0 : i32
    %c0_i32_1 = arith.constant 0 : i32
    return %c0_i32, %c0_i32_0 : i32, i32
  }
  func.func @transform_5(%arg0: i32) -> (i32, i32) {
    %c0_i32 = arith.constant 0 : i32
    %c0_i32_0 = arith.constant 0 : i32
    %c0_i32_1 = arith.constant 0 : i32
    return %c0_i32, %c0_i32_0 : i32, i32
  }
  func.func @transform_6(%arg0: i32) -> (i32, i32) {
    %c0_i32 = arith.constant 0 : i32
    %c0_i32_0 = arith.constant 0 : i32
    return %c0_i32, %arg0 : i32, i32
  }
}

</mosaic_0001>

<bundles_post_ra>
// kernel: tpu_custom_call.1
= control target key start
LH: loop header
LB: loop body
LE: loop exit
PB: predicated region body
PF: predicated region fallthrough
CT: control target
= control target key end

     0   :  { %11 = vsyncpa [#allocation3], 0  ;;  %s1293_s0 = inlined_call_operand.hbm [shape: f32[16,512], index: 0, kind: input, shape index: {}]   ;;  %s1294_s1 = inlined_call_operand.vmem [shape: bf16[8,16], index: 1, kind: input, shape index: {}]   ;;  %s1295_s2 = inlined_call_operand.vmem [shape: f32[8,1], index: 2, kind: input, shape index: {}]   ;;  %s1296_s3 = inlined_call_operand.vmem [shape: bf16[16,72], index: 3, kind: input, shape index: {}]   ;;  %s1297_s4 = inlined_call_operand.vmem [shape: f32[16,1], index: 4, kind: input, shape index: {}]   ;;  %s1298_s5 = inlined_call_operand.hbm [shape: bf16[72,256], index: 5, kind: input, shape index: {}]   ;;  %s1299_s6 = inlined_call_operand.hbm [shape: f32[16,512], index: 6, kind: output, shape index: {}]  }
   0x1   :  { %13 = vsyncpa [#allocation3 + $0x1], 0 }
   0x2   :  { %14 = vsyncpa [#allocation6], 0 }
   0x3   :  { %15 = vsyncpa [#allocation4], 0 }
   0x4   :  { %17 = vsyncpa [#allocation4 + $0x1], 0  ;;  %s1022_s21 = smov 0   ;;  %s1024_s22 = smov 0  }
   0x5   :  { %s1026_s23 = smov 0   ;;  %s1028_s24 = smov 0  }
   0x6 LB: > { %s1043_s25 = sadd.s32 4294967295, %s966_s24   ;;  %s676_s26 = sadd.s32 4294967294, %s966_s24   ;;  %s966_s24 = sphi %s1028_s24, %s1325_s24   ;;  %s962_s23 = sphi %s1026_s23, %s1324_s23   ;;  %s958_s22 = sphi %s1024_s22, %s1323_s22   ;;  %s954_s21 = sphi %s1022_s21, %s1322_s21  }
   0x7   : > { %s1047_s27 = sadd.s32 1, %s966_s24   ;;  %s30_s28 = sadd.s32 1, %s962_s23 }
   0x8   : > { %s27_s29 = ssub.s32 %s966_s24, %s1047_s27  ;;  %p37_p0 = scmp.ne.s32.totalorder %s962_s23, %s958_s22 }
   0x9   : > { %p28_p1 = scmp.eq.s32.totalorder %s27_s29, 0  ;;  %p38_p2 = scmp.eq.s32.totalorder %s966_s24, 0 }
   0xa   : > { %p43_p3 = scmp.ne.s32.totalorder %s958_s22, %s954_s21  ;;  %p1300_p4 = scmp.eq.s32.totalorder %s1043_s25, 0 }
   0xb   : > { %s1059_s30 = scalar_select %p28_p1, %s962_s23, %s30_s28  }
   0xc   : > { %p1061_p5 = por %p38_p2, %p37_p0  ;;  %p1067_p6 = por %p1300_p4, %p43_p3 }
   0xd   : > { %1304 = sst [smem:[#allocation11_spill]] %s1059_s30  ;;  %p172_p7 = scmp.eq.s32.totalorder %s1043_s25, 1 }
   0xe   : > { %s1305_s7 = scalar_select %p1061_p5, 1, 0 }
   0xf   : > { %s1306_s8 = scalar_select %p1067_p6, 1, 0 }
  0x10   : > { %p178_p8 = scmp.eq.s32.totalorder %s676_s26, 1  ;;  %p677_p9 = scmp.ge.s32.totalorder %s966_s24, 1 }
  0x11   : > { %p185_p10 = scmp.lt.s32.totalorder %s966_s24, 3  ;;  %p1074_p11 = por %p172_p7, %p37_p0 }
  0x12   : > { %p1078_p12 = por %p178_p8, %p43_p3  ;;  %s968_s12 = smov [#allocation5]  }
  0x13   : > { %s1307_s9 = scalar_select %p1074_p11, 1, 0 }
  0x14   : > { %s1308_s10 = scalar_select %p1078_p12, 1, 0 }
  0x15   : > { %p1082_p13 = pnand %p677_p9, %p185_p10  ;;  %s209_s13 = sshll.u32 %s968_s12, 4  ;;  %s210_s13 = int_to_ptr.vmem [resolvable:$true] %s209_s13 }
  0x16   : > { %s223_s15 = sand.u32 1, %s962_s23   ;;  %s838_s18 = scalar_lea.hbm %s1298_s5, 1152 }
  0x17   : > { %s1309_s11 = scalar_select %p1082_p13, 1, 0 }
  0x18   : > { %p716_p1 = pneg %p1082_p13  ;;  %p839_p7 = scmp.ne.s32.totalorder %s1298_s5, %s838_s18 }
  0x1a   : > { %p1090_p2 = pnand %p716_p1, %p1300_p4  ;;  %p845_p1 = scmp.lt.u32.totalorder %s838_s18, %s1298_s5 }
  0x1c   : > { %p840_p8 = pneg %p1090_p2 }
  0x1e   : > { %p841_p9 = pnand %p840_p8, %p839_p7 }
  0x20   : > { %p842_p10 = pneg %p841_p9 }
  0x22   : > { %p847_p4 = pnand %p845_p1, %p842_p10 }
  0x24   : > { %850 = shalt.err (!%p847_p4)
}
  0x25   : > { %s851_s29 = scalar_lea.vmem %s210_s13, 1152  ;;  %p859_p11 = scmp.lt.s32.totalorder %s210_s13, %s210_s13 }
  0x26   : > { %p852_p0 = scmp.ne.s32.totalorder %s210_s13, %s851_s29  ;;  %p860_p6 = scmp.lt.s32.totalorder %s851_s29, %s851_s29 }
  0x28   : > { %p854_p3 = pnand %p852_p0, %p840_p8  ;;  %p861_p13 = por %p860_p6, %p859_p11 }
  0x2a   : > { %p855_p12 = pneg %p854_p3 }
  0x2c   : > { %p862_p5 = pnand %p861_p13, %p855_p12 }
  0x2e   : > { %865 = shalt.err (!%p862_p5)
}
  0x2f   : > { %s969_s12 = smov 128   ;;  %s970_s16 = smov 8  }
  0x30   : > { %719 = dma.hbm_to_vmem [thread:$0]  (!%p1090_p2), %s1298_s5, 1152, %s210_s13, [#allocation6], %s969_s12, %s969_s12, %s970_s16  }
  0x31   : > { %p1311_p4 = scmp.ne.s32.totalorder %s1305_s7, 0  ;;  %p1312_p7 = scmp.lt.s32.totalorder %s966_s24, 2 }
  0x32   : > { %s680_s20 = sshll.u32 %s223_s15, 5  ;;  %s706_s26 = sshll.u32 %s966_s24, 8 }
  0x33   : > { %p1117_p0 = pnand %p1312_p7, %p1311_p4  ;;  %s1125_s30 = scalar_lea.hbm %s1293_s0, %s706_s26 }
  0x34   : > { %s227_s13 = scalar_lea.vmem [#allocation2], %s680_s20  ;;  %s1129_s14 = scalar_lea.sflag [#allocation3], %s223_s15 }
  0x35   : > { %s234_s7 = sshll.u32 %s227_s13, 4  ;;  %s866_s12 = scalar_lea.hbm %s1125_s30, 512  ;;  %s1127_s7 = int_to_ptr.vmem [resolvable:$true] %s234_s7 }
  0x36   : > { %p867_p5 = scmp.ne.s32.totalorder %s1125_s30, %s866_s12  ;;  %p868_p6 = pneg %p1117_p0 }
  0x37   : > { %s871_s18 = scalar_lea.hbm %s1293_s0, 1024  ;;  %p872_p13 = scmp.lt.u32.totalorder %s1125_s30, %s1293_s0 }
  0x38   : > { %p869_p11 = pnand %p868_p6, %p867_p5  ;;  %p873_p2 = scmp.lt.u32.totalorder %s871_s18, %s866_s12 }
  0x39   : > { %p875_p8 = scmp.lt.u32.totalorder %s866_s12, %s1125_s30 }
  0x3a   : > { %p870_p12 = pneg %p869_p11  ;;  %p874_p3 = por %p873_p2, %p872_p13 }
  0x3c   : > { %p876_p9 = por %p875_p8, %p874_p3 }
  0x3e   : > { %p877_p10 = pnand %p876_p9, %p870_p12 }
  0x40   : > { %880 = shalt.err (!%p877_p10)
}
  0x41   : > { %s881_s15 = scalar_lea.vmem %s1127_s7, 512  ;;  %s971_s20 = smov [#allocation2]  }
  0x42   : > { %p882_p1 = scmp.ne.s32.totalorder %s1127_s7, %s881_s15  ;;  %s886_s29 = sshll.u32 %s971_s20, 4  ;;  %s887_s29 = int_to_ptr.vmem [resolvable:$false] %s886_s29 }
  0x43   : > { %s888_s13 = scalar_lea.vmem %s887_s29, 1024  ;;  %p889_p5 = scmp.lt.s32.totalorder %s1127_s7, %s887_s29 }
  0x44   : > { %p884_p4 = pnand %p882_p1, %p868_p6  ;;  %p890_p11 = scmp.lt.s32.totalorder %s888_s13, %s881_s15 }
  0x46   : > { %p885_p7 = pneg %p884_p4  ;;  %p891_p13 = por %p890_p11, %p889_p5 }
  0x48   : > { %p892_p2 = pnand %p891_p13, %p885_p7 }
  0x4a   : > { %895 = shalt.err (!%p892_p2)
}
  0x4b   : > { %s972_s12 = smov 512   ;;  %s973_s16 = smov 256  }
  0x4c   : > { %s974_s17 = smov 16   ;;  %p1314_p6 = scmp.ne.s32.totalorder %s1309_s11, 0 }
  0x4d   : > { %723 = dma.hbm_to_vmem [thread:$0]  (!%p1117_p0), %s1125_s30, 512, %s1127_s7, %s1129_s14, %s972_s12, %s973_s16, %s974_s17  }
  0x4e   : > { %246 = sbr.rel (%p1314_p6) target bundleno = 695 (0x2b7), region = 44  ;;  %s1160_s18 = sand.u32 (!%p1314_p6), 1, %s958_s22  }
  0x4f   : > { %s684_s26 = sshll.u32 (!%p1314_p6), %s1160_s18, 5  ;;  %s249_s28 = scalar_lea.sflag (!%p1314_p6), [#allocation3], %s1160_s18 }
  0x50   : > { %s252_s15 = scalar_lea.vmem (!%p1314_p6), [#allocation2], %s684_s26  ;;  %p1315_p12 = scmp.ne.s32.totalorder (!%p1314_p6), %s1306_s8, 0 }
  0x55   : > { %941 = dma.done.wait (%p1315_p12), %s249_s28, 512  }
  0x56   : > { %943 = vsyncadd (%p1315_p12), %s249_s28, 4294966784  ;;  %p1316_p0 = scmp.eq.s32.totalorder %s1043_s25, 0 }
  0x58   : > { %945 = dma.done.wait (%p1316_p0), [#allocation6], 1152   ;;  %p1317_p3 = pmov %p1316_p0 }
  0x59   : > { %v975_v0 = vmov 0   ;;  %v1174_v1 = vld [vmem:[%s252_s15 + $0x8] sm:$0xff]  ;;  %v1176_v2 = vld [vmem:[%s252_s15 + $0x18] sm:$0xff]  ;;  %v1178_v3 = vld [vmem:[%s252_s15] sm:$0xff]  ;;  %vm301_vm0 = vcmask 130048   ;;  %s976_s7 = smov 16   ;;  %v356_v23 = vlaneseq }
  0x5a   : > { %947 = vsyncadd (%p1317_p3), [#allocation6], 4294966144  ;;  %337 = vmatprep.mubr.bf16.mxu0 %v975_v0  ;;  %781 = vset.pattern.permute.xlu0 %v975_v0  ;;  %v294_v4 = vpack.c.bf16 %v1176_v2, %v1174_v1  ;;  %v1182_v5 = vld [vmem:[%s252_s15 + $0x10] sm:$0xff]  ;;  %v295_v6 = vld [vmem:[%s1295_s2] sm:$0xff]  ;;  %s977_s14 = smov 17   ;;  %s978_s20 = smov 15  }
  0x5b   : > { %548 = vmatprep.mubr.bf16.mxu1 %v975_v0  ;;  %822 = vset.pattern.permute.xlu1 %v975_v0  ;;  %v293_v7 = vpack.c.bf16 %v1182_v5, %v1178_v3  ;;  %v292_v8 = vld [vmem:[%s1294_s1] sm:$0xf]  ;;  %s979_s29 = smov 1   ;;  %s980_s13 = smov 127   ;;  %v489_v21 = vld [vmem:[%s1297_s4 + $0x8] sm:$0xff]  ;;  %v1205_v24 = vand.u32 127, %v356_v23 }
  0x5c   : > { %298 = vperm.xlu0 %781, %v295_v6   ;;  %305 = vmatprep.subr.bf16.mxu0 %v294_v4  ;;  %s981_s12 = smov 113   ;;  %s982_s16 = smov 112   ;;  %v488_v22 = vld [vmem:[%s1297_s4] sm:$0xff]  ;;  %v826_v47 = vld [vmem:[#allocation5 + $0x14] ss:$8 sps:$4 sm:$0xff]   ;;  %vm509_vm11 = vcmask 1043456  }
  0x5d   : > { %306 = vmatpush1.bf16.msra.mxu0 %v293_v7  ;;  %s983_s17 = smov 111   ;;  %vm358_vm3 = vcmp.lt.s32.totalorder %v1205_v24, 17  ;;  %vm365_vm4 = vcmp.lt.s32.totalorder %v1205_v24, 16  ;;  %v823_v31 = vld [vmem:[#allocation5 + $0x4] ss:$8 sps:$4 sm:$0xff]   ;;  %vm372_vm5 = vcmp.lt.s32.totalorder %v1205_v24, 15 }
  0x5e   : > { %v825_v32 = vld [vmem:[#allocation5] ss:$8 sps:$4 sm:$0xff]   ;;  %vm379_vm6 = vcmp.lt.s32.totalorder %v1205_v24, 1  ;;  %v828_v48 = vld [vmem:[#allocation5 + $0x10] ss:$8 sps:$4 sm:$0xff]   ;;  %vm386_vm7 = vcmp.lt.s32.totalorder %v1205_v24, 127 }
  0x5f   : > { %vm393_vm8 = vcmp.lt.s32.totalorder %v1205_v24, 113  ;;  %v428_v59 = vld [vmem:[#allocation5 + $0x40] sm:$0xff]  ;;  %vm400_vm9 = vcmp.lt.s32.totalorder %v1205_v24, 112  ;;  %vm407_vm10 = vcmp.lt.s32.totalorder %v1205_v24, 111  ;;  %vm505_vm12 = vcmask 588800   ;;  %p1318_p9 = scmp.ne.s32.totalorder %s1307_s9, 0 }
  0x60   : > { %687 = vmatmul.mubr.msk.bf16.vlgmr.msra.gmra.mrb[0].mxu0 %vm301_vm0, %v292_v8  ;;  %v829_v0 = vld [vmem:[#allocation5 + $0x24] ss:$8 sps:$4 sm:$0xff]   ;;  %v831_v4 = vld [vmem:[#allocation5 + $0x20] ss:$8 sps:$4 sm:$0xff]  }
  0x61   : > { %v837_v24 = vld [vmem:[%s1296_s3] sm:$0xff]  }
  0xdb   : > { %v299_v9 = vpop.permute.xlu0 %298 }
 0x133   : > { %v339_v10 = vpop.f32.mrb[0].mxu0 }
 0x134   : > { %v340_v11 = vadd.f32 %v339_v10, %v299_v9  ;;  %v341_v12 = vpop.f32.mrb[1].mxu0 }
 0x135   : > { %v342_v13 = vadd.f32 %v341_v12, %v299_v9  ;;  %v343_v14 = vpop.f32.mrb[2].mxu0  ;;  %v697_v12 = vcombine.high %v428_v59, %v428_v59 }
 0x136   : > { %vm346_vm1 = vcmp.gt.f32.partialorder %v340_v11, 0.0  ;;  %v348_v15 = vmul.f32 0.1, %v340_v11  ;;  %v344_v16 = vpop.f32.mrb[3].mxu0 }
 0x137   : > { %vm347_vm2 = vcmp.gt.f32.partialorder %v342_v13, 0.0  ;;  %v349_v17 = vmul.f32 0.1, %v342_v13 }
 0x138   : > { %v1192_v18 = vsel %vm346_vm1, %v340_v11, %v348_v15 }
 0x139   : > { %v1194_v19 = vsel %vm347_vm2, %v342_v13, %v349_v17  ;;  %v696_v13 = vcombine.low %v428_v59, %v428_v59 }
 0x13a   : > { %v787_v20 = vpack.i.bf16 %v1194_v19, %v1192_v18 }
 0x13c   : > { %788 = vrot.lane.b32.xlu1 %v787_v20, %s976_s7  ;;  %783 = vrot.lane.b32.xlu0 %v787_v20, %s977_s14  ;;  %s284_s14 = scalar_lea.vmem [#allocation7], %s684_s26 }
 0x140   : > { %793 = vrot.lane.b32.xlu1 %v787_v20, %s978_s20  ;;  %798 = vrot.lane.b32.xlu0 %v787_v20, %s979_s29  ;;  %s593_s20 = sshll.u32 %s284_s14, 4  ;;  %s707_s29 = sshll.u32 %s1043_s25, 8  ;;  %s1240_s20 = int_to_ptr.vmem [resolvable:$true] %s593_s20 }
 0x144   : > { %803 = vrot.lane.b32.xlu1 %v787_v20, %s980_s13  ;;  %808 = vrot.lane.b32.xlu0 %v787_v20, %s981_s12  ;;  %s1247_s13 = scalar_lea.hbm %s1299_s6, %s707_s29  ;;  %s580_s12 = scalar_lea.sflag [#allocation4], %s1160_s18 }
 0x148   : > { %813 = vrot.lane.b32.xlu1 %v787_v20, %s982_s16  ;;  %818 = vrot.lane.b32.xlu0 %v787_v20, %s983_s17  ;;  %s896_s16 = scalar_lea.vmem %s1240_s20, 512  ;;  %s984_s17 = smov [#allocation7]  }
 0x149   : > { %p897_p8 = scmp.ne.s32.totalorder %s1240_s20, %s896_s16  ;;  %s900_s28 = sshll.u32 %s984_s17, 4  ;;  %s901_s28 = int_to_ptr.vmem [resolvable:$false] %s900_s28 }
 0x14a   : > { %s902_s15 = scalar_lea.vmem %s901_s28, 1024  ;;  %p903_p4 = scmp.lt.s32.totalorder %s1240_s20, %s901_s28 }
 0x14b   : > { %p898_p10 = pnand %p897_p8, %p1318_p9  ;;  %p904_p7 = scmp.lt.s32.totalorder %s902_s15, %s896_s16 }
 0x14c   : > { %497 = vperm.xlu0 %781, %v489_v21   ;;  %492 = vperm.xlu1 %822, %v488_v22  }
 0x14d   : > { %p899_p1 = pneg %p898_p10  ;;  %p905_p5 = por %p904_p7, %p903_p4 }
 0x14f   : > { %p906_p11 = pnand %p905_p5, %p899_p1 }
 0x1ae   : > { %v789_v25 = vpop.permute.xlu1 %788  ;;  %v784_v26 = vpop.permute.xlu0 %783 }
 0x1af   : > { %v791_v27 = vunpack.i.h.bf16 %v789_v25  ;;  %v790_v28 = vunpack.i.l.bf16 %v789_v25  ;;  %v786_v29 = vunpack.i.h.bf16 %v784_v26  ;;  %v785_v30 = vunpack.i.l.bf16 %v784_v26  ;;  %v832_v25 = vld [vmem:[#allocation5 + $0x34] ss:$8 sps:$4 sm:$0xff]   ;;  %v834_v26 = vld [vmem:[#allocation5 + $0x30] ss:$8 sps:$4 sm:$0xff]  }
 0x1b1   : > { %v359_v33 = vsel %vm358_vm3, %v785_v30, %v786_v29  ;;  %v366_v34 = vsel %vm365_vm4, %v790_v28, %v791_v27  ;;  %v360_v35 = vsel %vm358_vm3, %v786_v29, %v785_v30  ;;  %v367_v36 = vsel %vm365_vm4, %v791_v27, %v790_v28 }
 0x1b2   : > { %v794_v37 = vpop.permute.xlu1 %793  ;;  %v799_v38 = vpop.permute.xlu0 %798  ;;  %v411_v39 = vpack.c.bf16 %v366_v34, %v359_v33  ;;  %v410_v40 = vpack.c.bf16 %v367_v36, %v360_v35 }
 0x1b3   : > { %v796_v41 = vunpack.i.h.bf16 %v794_v37  ;;  %v795_v42 = vunpack.i.l.bf16 %v794_v37  ;;  %v801_v43 = vunpack.i.h.bf16 %v799_v38  ;;  %v800_v44 = vunpack.i.l.bf16 %v799_v38 }
 0x1b4   : > { %v477_v45 = vmul.bf16 %v823_v31, %v411_v39  ;;  %v476_v46 = vmul.bf16 %v825_v32, %v410_v40 }
 0x1b5   : > { %v373_v49 = vsel %vm372_vm5, %v795_v42, %v796_v41  ;;  %v374_v50 = vsel %vm372_vm5, %v796_v41, %v795_v42  ;;  %v380_v51 = vsel %vm379_vm6, %v800_v44, %v801_v43  ;;  %v381_v52 = vsel %vm379_vm6, %v801_v43, %v800_v44 }
 0x1b6   : > { %v804_v53 = vpop.permute.xlu1 %803  ;;  %v809_v54 = vpop.permute.xlu0 %808  ;;  %516 = vmatprep.subr.bf16.mxu1 %v477_v45  ;;  %v413_v55 = vpack.c.bf16 %v380_v51, %v373_v49  ;;  %v412_v56 = vpack.c.bf16 %v381_v52, %v374_v50 }
 0x1b7   : > { %v806_v57 = vunpack.i.h.bf16 %v804_v53  ;;  %v805_v58 = vunpack.i.l.bf16 %v804_v53  ;;  %517 = vmatpush1.bf16.msra.mxu1 %v476_v46  ;;  %v811_v60 = vunpack.i.h.bf16 %v809_v54  ;;  %v810_v61 = vunpack.i.l.bf16 %v809_v54 }
 0x1b8   : > { %v479_v62 = vmul.bf16 %v826_v47, %v413_v55  ;;  %v478_v63 = vmul.bf16 %v828_v48, %v412_v56 }
 0x1b9   : > { %v387_v6 = vsel %vm386_vm7, %v805_v58, %v806_v57  ;;  %v388_v7 = vsel %vm386_vm7, %v806_v57, %v805_v58  ;;  %v394_v20 = vsel %vm393_vm8, %v810_v61, %v811_v60  ;;  %v395_v21 = vsel %vm393_vm8, %v811_v60, %v810_v61 }
 0x1ba   : > { %v814_v8 = vpop.permute.xlu1 %813  ;;  %v819_v9 = vpop.permute.xlu0 %818  ;;  %518 = vmatprep.subr.bf16.mxu1 %v479_v62  ;;  %v415_v10 = vpack.c.bf16 %v388_v7, %v1194_v19  ;;  %v414_v11 = vpack.c.bf16 %v387_v6, %v1192_v18 }
 0x1bb   : > { %v816_v14 = vunpack.i.h.bf16 %v814_v8  ;;  %v815_v15 = vunpack.i.l.bf16 %v814_v8  ;;  %v821_v16 = vunpack.i.h.bf16 %v819_v9  ;;  %v820_v17 = vunpack.i.l.bf16 %v819_v9  ;;  %519 = vmatpush1.bf16.msra.mxu1 %v478_v63 }
 0x1bc   : > { %v481_v22 = vmul.bf16 %v829_v0, %v415_v10  ;;  %v480_v23 = vmul.bf16 %v831_v4, %v414_v11 }
 0x1bd   : > { %v401_v18 = vsel %vm400_vm9, %v815_v15, %v816_v14  ;;  %v402_v19 = vsel %vm400_vm9, %v816_v14, %v815_v15  ;;  %v409_v27 = vsel %vm407_vm10, %v821_v16, %v820_v17  ;;  %v408_v28 = vsel %vm407_vm10, %v820_v17, %v821_v16 }
 0x1be   : > { %v419_v29 = vpack.c.bf16 %v409_v27, %v409_v27  ;;  %520 = vmatprep.subr.bf16.mxu1 %v481_v22  ;;  %v417_v30 = vpack.c.bf16 %v402_v19, %v395_v21  ;;  %v416_v31 = vpack.c.bf16 %v401_v18, %v394_v20  ;;  %v418_v32 = vpack.c.bf16 %v408_v28, %v408_v28 }
 0x1bf   : > { %521 = vmatpush1.bf16.msra.mxu1 %v480_v23 }
 0x1c0   : > { %v483_v33 = vmul.bf16 %v832_v25, %v417_v30  ;;  %v482_v34 = vmul.bf16 %v834_v26, %v416_v31  ;;  %v485_v35 = vmul.bf16 %v697_v12, %v419_v29  ;;  %v484_v36 = vmul.bf16 %v696_v13, %v418_v32 }
 0x1c2   : > { %522 = vmatprep.subr.bf16.mxu1 %v483_v33  ;;  %v511_v37 = vsel %vm509_vm11, %v484_v36, 0 }
 0x1c3   : > { %523 = vmatpush1.bf16.msra.mxu1 %v482_v34 }
 0x1c4   : > { %699 = vmatprep.subr.msk.bf16.mxu1 %vm509_vm11, %v485_v35 }
 0x1c7   : > { %525 = vmatpush1.bf16.msra.mxu1 %v511_v37 }
 0x1ca   : > { %700 = vmatmul.mubr.msk.bf16.vlgmr.msra.gmra.mrb[0].mxu1 %vm505_vm12, %v837_v24 }
 0x1cb   : > { %v493_v38 = vpop.permute.xlu1 %492  ;;  %v498_v42 = vpop.permute.xlu0 %497 }
 0x29d   : > { %v550_v39 = vpop.f32.mrb[0].mxu1 }
 0x29e   : > { %v551_v40 = vadd.f32 %v550_v39, %v493_v38  ;;  %v552_v41 = vpop.f32.mrb[1].mxu1 }
 0x29f   : > { %v553_v43 = vadd.f32 %v552_v41, %v493_v38  ;;  %v554_v44 = vpop.f32.mrb[2].mxu1 }
 0x2a0   : > { %vm559_vm13 = vcmp.gt.f32.partialorder %v551_v40, 0.0  ;;  %v563_v45 = vmul.f32 0.1, %v551_v40  ;;  %v555_v46 = vadd.f32 %v554_v44, %v498_v42  ;;  %v556_v47 = vpop.f32.mrb[3].mxu1 }
 0x2a1   : > { %vm560_vm14 = vcmp.gt.f32.partialorder %v553_v43, 0.0  ;;  %v564_v48 = vmul.f32 0.1, %v553_v43  ;;  %v557_v49 = vadd.f32 %v556_v47, %v498_v42 }
 0x2a2   : > { %v567_v50 = vsel %vm559_vm13, %v551_v40, %v563_v45  ;;  %vm561_vm15 = vcmp.gt.f32.partialorder %v555_v46, 0.0  ;;  %v565_v51 = vmul.f32 0.1, %v555_v46 }
 0x2a3   : > { %v571_v52 = vadd.f32 %v567_v50, %v1178_v3  ;;  %v568_v53 = vsel %vm560_vm14, %v553_v43, %v564_v48  ;;  %vm562_vm0 = vcmp.gt.f32.partialorder %v557_v49, 0.0  ;;  %v566_v54 = vmul.f32 0.1, %v557_v49 }
 0x2a4   : > { %v572_v55 = vadd.f32 %v568_v53, %v1174_v1  ;;  %v569_v56 = vsel %vm561_vm15, %v555_v46, %v565_v51 }
 0x2a5   : > { %575 = vst [vmem:[%s284_s14] sm:$0xff] %v571_v52  ;;  %v573_v57 = vadd.f32 %v569_v56, %v1182_v5  ;;  %v570_v58 = vsel %vm562_vm0, %v557_v49, %v566_v54 }
 0x2a6   : > { %576 = vst [vmem:[%s284_s14 + $0x8] sm:$0xff] %v572_v55  ;;  %v574_v3 = vadd.f32 %v570_v58, %v1176_v2 }
 0x2a7   : > { %577 = vst [vmem:[%s284_s14 + $0x10] sm:$0xff] %v573_v57 }
 0x2a8   : > { %578 = vst [vmem:[%s284_s14 + $0x18] sm:$0xff] %v574_v3 }
 0x2a9   : > { %909 = shalt.err (!%p906_p11)
}
 0x2aa   : > { %s910_s30 = scalar_lea.hbm %s1247_s13, 512  ;;  %s914_s19 = scalar_lea.hbm %s1299_s6, 1024 }
 0x2ab   : > { %p911_p13 = scmp.ne.s32.totalorder %s1247_s13, %s910_s30  ;;  %p915_p12 = scmp.lt.u32.totalorder %s1247_s13, %s1299_s6 }
 0x2ac   : > { %p916_p0 = scmp.lt.u32.totalorder %s914_s19, %s910_s30  ;;  %p918_p8 = scmp.lt.u32.totalorder %s910_s30, %s1247_s13 }
 0x2ad   : > { %p912_p2 = pnand %p911_p13, %p1318_p9 }
 0x2ae   : > { %p917_p3 = por %p916_p0, %p915_p12 }
 0x2af   : > { %p913_p6 = pneg %p912_p2 }
 0x2b0   : > { %p919_p10 = por %p918_p8, %p917_p3 }
 0x2b2   : > { %p920_p1 = pnand %p919_p10, %p913_p6 }
 0x2b4   : > { %923 = shalt.err (!%p920_p1)
}
 0x2b5   : > { %s985_s25 = smov 256   ;;  %s986_s26 = smov 512  }
 0x2b6   : > { %714 = dma.vmem_to_hbm [thread:$0]  (%p1318_p9), %s1240_s20, 512, %s1247_s13, %s580_s12, %s985_s25, %s986_s26, %s976_s7  }
 0x2b7 PF: > { %s608_s16 = sand.u32 1, %s954_s21   ;;  %p1319_p4 = scmp.ne.s32.totalorder %s1308_s10, 0 }
 0x2b8   : > { %p1320_p7 = scmp.ge.s32.totalorder %s966_s24, 2  ;;  %s609_s17 = scalar_lea.sflag [#allocation4], %s608_s16 }
 0x2ba   : > { %p725_p5 = pnand %p1320_p7, %p1319_p4 }
 0x2bc   : > { %949 = dma.done.wait (!%p725_p5), %s609_s17, 512  }
 0x2bd   : > { %951 = vsyncadd (!%p725_p5), %s609_s17, 4294966784  ;;  %s1321_s28 = sld [smem:[#allocation11_spill]]  ;;  %p20_p11 = scmp.ge.s32.totalorder %s1047_s27, 4  }
 0x2be   : > { %s1322_s21 = smov %s958_s22  ;;  %s1323_s22 = smov %s962_s23 }
 0x2bf   : > { %s1325_s24 = smov %s1047_s27  ;;  %22 = sbr.rel (!%p20_p11) target bundleno = 6 (0x6), region = 93 }
 0x2c3   : > { %s1324_s23 = smov %s1321_s28 }
 0x2c6   :  { %614 = vsyncpa [#allocation3], 1 }
 0x2c7   :  { %616 = vsyncpa [#allocation3 + $0x1], 1 }
 0x2c8   :  { %617 = vsyncpa [#allocation6], 1 }
 0x2c9   :  { %618 = vsyncpa [#allocation4], 1 }
 0x2ca   :  { %620 = vsyncpa [#allocation4 + $0x1], 1 }

</bundles_post_ra>
